<compile_context>
chip_gen: v5e
topology: v5e:2x2
jax: 0.10.0
libtpu: 0.0.40
codegen_flags: <defaults>
</compile_context>

<pallas_src>
import math
import jax
import jax.numpy as jnp
from jax.experimental import pallas as pl
from jax.experimental.pallas import tpu as pltpu

# Logical layer widths (PyTorch module) and lane-padded widths used on-chip.
H1, H2, H3, OUT = 200, 200, 10, 3
H1P, H2P, H3P, OUTP = 256, 256, 128, 128


def mlp_kernel(x_ref, w1_ref, b1_ref, w2_ref, b2_ref,
               w3_ref, b3_ref, w4_ref, b4_ref, o_ref):
    """One batch tile of the 4-layer MLP. Weights are VMEM-resident across steps."""
    cdt = w1_ref.dtype                               # matmul-operand dtype (bf16 or f32)

    # x arrives already in the compute dtype (cast host/wrapper-side).
    h = jnp.dot(x_ref[...], w1_ref[...], preferred_element_type=jnp.float32) + b1_ref[...]
    h = jnp.maximum(h, 0.0)                          # ReLU

    h = jnp.dot(h.astype(cdt), w2_ref[...], preferred_element_type=jnp.float32) + b2_ref[...]
    h = jnp.maximum(h, 0.0)                          # Dropout (eval: identity) + ReLU

    h = jnp.dot(h.astype(cdt), w3_ref[...], preferred_element_type=jnp.float32) + b3_ref[...]
    h = jnp.maximum(h, 0.0)                          # Dropout (eval: identity) + ReLU

    h = jnp.dot(h.astype(cdt), w4_ref[...], preferred_element_type=jnp.float32) + b4_ref[...]
    o_ref[...] = jnp.tanh(h).astype(o_ref.dtype)     # Tanh; padded lanes are tanh(0)=0


def _round_up(n, m):
    return ((n + m - 1) // m) * m


def _pad2d(a, rows, cols):
    return jnp.pad(a, ((0, rows - a.shape[0]), (0, cols - a.shape[1])))


def prepare_params(params, *, use_bf16=True):
    """One-time host-side prep: zero-pad weights/biases to lane-friendly widths
    and cast weights for the MXU. Call ONCE and reuse across forward calls."""
    w1, b1, w2, b2, w3, b3, w4, b4 = params
    wdt = jnp.bfloat16 if use_bf16 else jnp.float32
    x_dim = w1.shape[0]
    xdp = _round_up(x_dim, 128)                       # lane-aligned K for layer 1
    w1p = _pad2d(w1, xdp, H1P).astype(wdt)
    b1p = _pad2d(b1, 1, H1P)                          # biases stay f32
    w2p = _pad2d(w2, H1P, H2P).astype(wdt)
    b2p = _pad2d(b2, 1, H2P)
    w3p = _pad2d(w3, H2P, H3P).astype(wdt)
    b3p = _pad2d(b3, 1, H3P)
    w4p = _pad2d(w4, H3P, OUTP).astype(wdt)
    b4p = _pad2d(b4, 1, OUTP)
    return (w1p, b1p, w2p, b2p, w3p, b3p, w4p, b4p)


def _nn_forward_impl(x, prepared, block_m=2048):
    """prepared = prepare_params(params). Returns (batch, 3) float32."""
    batch, x_dim = x.shape
    w1p = prepared[0]
    xdp, _ = w1p.shape
    cdt = w1p.dtype                                   # compute dtype (bf16 or f32)
    out_dt = cdt                                      # bf16 output halves the dominant
                                                      # HBM write stream; f32 path stays f32.

    # Batch tile: large enough to amortize per-step overhead, multiple of 8,
    # but clamped so there are >= 2 grid steps when the batch allows it
    # (lets "parallel" shard across v7x's 2 TensorCores).
    bm = max(8, min(block_m, _round_up(-(-batch // 2), 8)))
    b_pad = _round_up(batch, bm)
    grid = (b_pad // bm,)

    # Pad batch + x_dim and cast to the compute dtype in the wrapper
    # (halves input DMA bytes in the bf16 path, removes in-kernel VPU cast).
    xp = x
    if b_pad != batch or xdp != x_dim:
        xp = jnp.pad(x, ((0, b_pad - batch), (0, xdp - x_dim)))
    xp = xp.astype(cdt)

    weight_bytes = sum(int(p.size) * p.dtype.itemsize for p in prepared)
    cost = pl.CostEstimate(
        flops=2 * b_pad * (xdp * H1P + H1P * H2P + H2P * H3P + H3P * OUTP),
        transcendentals=b_pad * OUTP,
        bytes_accessed=(b_pad * xdp * xp.dtype.itemsize
                        + b_pad * OUTP * jnp.dtype(out_dt).itemsize
                        + weight_bytes),
    )

    out = pl.pallas_call(
        mlp_kernel,
        out_shape=jax.ShapeDtypeStruct((b_pad, OUTP), out_dt),
        grid=grid,
        in_specs=[pl.BlockSpec((bm, xdp), lambda i: (i, 0))]               # streamed x tile
                 + [pl.BlockSpec(p.shape, lambda i: (0, 0)) for p in prepared],  # resident weights
        out_specs=pl.BlockSpec((bm, OUTP), lambda i: (i, 0)),              # lane-dense store
        compiler_params=pltpu.CompilerParams(
            dimension_semantics=("parallel",),
            vmem_limit_bytes=32 * 1024 * 1024,
        ),
        cost_estimate=cost,
    )(xp, *prepared)

    return out[:batch, :OUT].astype(jnp.float32)


nn_forward = jax.jit(_nn_forward_impl, static_argnames=("block_m",))


def kaiming_uniform(key, fan_in, fan_out):
    """PyTorch nn.init.kaiming_uniform_(mode='fan_in', nonlinearity='relu'):
    gain = sqrt(2), bound = gain * sqrt(3 / fan_in). Weight returned as (in, out)."""
    bound = math.sqrt(2.0) * math.sqrt(3.0 / fan_in)
    return jax.random.uniform(key, (fan_in, fan_out), jnp.float32, -bound, bound)


def init_params(key, x_dim):
    dims = [(x_dim, H1), (H1, H2), (H2, H3), (H3, OUT)]
    keys = jax.random.split(key, len(dims))
    params = []
    for k, (fi, fo) in zip(keys, dims):
        w = kaiming_uniform(k, fi, fo)
        b = jnp.zeros((1, fo), jnp.float32)   # nn.init.constant_(bias, 0)
        params.extend([w, b])
    return tuple(params)


def jax_reference(x, params):
    w1, b1, w2, b2, w3, b3, w4, b4 = params
    h = jnp.maximum(x @ w1 + b1, 0.0)
    h = jnp.maximum(h @ w2 + b2, 0.0)
    h = jnp.maximum(h @ w3 + b3, 0.0)
    return jnp.tanh(h @ w4 + b4)


if __name__ == "__main__":
    key = jax.random.PRNGKey(0)
    k_x, k_x2, k_p = jax.random.split(key, 3)

    batch, x_dim = 8, 32
    x = jax.random.normal(k_x, (batch, x_dim), jnp.float32)
    params = init_params(k_p, x_dim)
    ref = jax_reference(x, params)

    # Prepare (pad/cast) weights ONCE per precision mode, reuse across calls.
    prep_f32 = prepare_params(params, use_bf16=False)
    prep_bf16 = prepare_params(params, use_bf16=True)

    # f32 path: exact match against the pure-JAX reference.
    out_f32 = nn_forward(x, prep_f32)
    jax.block_until_ready(out_f32)
    assert out_f32.shape == (batch, OUT)
    assert jnp.allclose(out_f32, ref, atol=1e-5, rtol=1e-5)

    # bf16-MXU path (bf16 operands + bf16 padded output, f32 accumulation).
    out_bf16 = nn_forward(x, prep_bf16)
    jax.block_until_ready(out_bf16)
    assert jnp.allclose(out_bf16, ref, atol=2e-2, rtol=2e-2)

    # Exercise the multi-step grid + batch/x_dim padding path.
    batch2 = 250
    x2 = jax.random.normal(k_x2, (batch2, x_dim), jnp.float32)
    out2 = nn_forward(x2, prep_bf16, block_m=64)
    jax.block_until_ready(out2)
    ref2 = jax_reference(x2, params)
    assert out2.shape == (batch2, OUT)
    assert jnp.allclose(out2, ref2, atol=2e-2, rtol=2e-2)

    # Default large-tile path (bm clamped to ceil(batch/2) -> 2 grid steps).
    out3 = nn_forward(x2, prep_bf16)
    jax.block_until_ready(out3)
    assert jnp.allclose(out3, ref2, atol=2e-2, rtol=2e-2)

    print("KERNEL_OK")
</pallas_src>

<mosaic_0001>
module attributes {stable_mosaic.version = 11 : i64} {
  func.func @mlp_kernel(%arg0: i32, %arg1: memref<8x128xf32, #tpu.memory_space<vmem>>, %arg2: memref<128x256xf32, #tpu.memory_space<vmem>>, %arg3: memref<1x256xf32, #tpu.memory_space<vmem>>, %arg4: memref<256x256xf32, #tpu.memory_space<vmem>>, %arg5: memref<1x256xf32, #tpu.memory_space<vmem>>, %arg6: memref<256x128xf32, #tpu.memory_space<vmem>>, %arg7: memref<1x128xf32, #tpu.memory_space<vmem>>, %arg8: memref<128x128xf32, #tpu.memory_space<vmem>>, %arg9: memref<1x128xf32, #tpu.memory_space<vmem>>, %arg10: memref<8x128xf32, #tpu.memory_space<vmem>>) attributes {dimension_semantics = [#tpu.dimension_semantics<parallel>], iteration_bounds = array<i64: 1>, scalar_prefetch = 0 : i64, scratch_operands = 0 : i64, tpu.core_type = #tpu.core_type<tc>, window_params = [{transform_indices = @transform_0, window_bounds = array<i64: 8, 128>}, {pipeline_mode = #tpu.pipeline_mode<synchronous>, transform_indices = @transform_1, window_bounds = array<i64: 128, 256>}, {pipeline_mode = #tpu.pipeline_mode<synchronous>, transform_indices = @transform_2, window_bounds = array<i64: 1, 256>}, {pipeline_mode = #tpu.pipeline_mode<synchronous>, transform_indices = @transform_3, window_bounds = array<i64: 256, 256>}, {pipeline_mode = #tpu.pipeline_mode<synchronous>, transform_indices = @transform_4, window_bounds = array<i64: 1, 256>}, {pipeline_mode = #tpu.pipeline_mode<synchronous>, transform_indices = @transform_5, window_bounds = array<i64: 256, 128>}, {pipeline_mode = #tpu.pipeline_mode<synchronous>, transform_indices = @transform_6, window_bounds = array<i64: 1, 128>}, {pipeline_mode = #tpu.pipeline_mode<synchronous>, transform_indices = @transform_7, window_bounds = array<i64: 128, 128>}, {pipeline_mode = #tpu.pipeline_mode<synchronous>, transform_indices = @transform_8, window_bounds = array<i64: 1, 128>}, {transform_indices = @transform_9, window_bounds = array<i64: 8, 128>}]} {
    %c0 = arith.constant 0 : index
    %c0_0 = arith.constant 0 : index
    %0 = vector.load %arg1[%c0, %c0_0] : memref<8x128xf32, #tpu.memory_space<vmem>>, vector<8x128xf32>
    %c0_1 = arith.constant 0 : index
    %c0_2 = arith.constant 0 : index
    %1 = vector.load %arg2[%c0_1, %c0_2] : memref<128x256xf32, #tpu.memory_space<vmem>>, vector<128x256xf32>
    %cst = arith.constant dense<0.000000e+00> : vector<8x256xf32>
    %2 = tpu.matmul %0, %1, %cst {dimension_numbers = #tpu.dot_dimension_numbers<[1], [0], [0], [1], [0, 0, 1, 1], [], []>} : vector<8x128xf32>, vector<128x256xf32>, vector<8x256xf32> -> vector<8x256xf32>
    %c0_3 = arith.constant 0 : index
    %c0_4 = arith.constant 0 : index
    %3 = vector.load %arg3[%c0_3, %c0_4] : memref<1x256xf32, #tpu.memory_space<vmem>>, vector<1x256xf32>
    %4 = vector.broadcast %3 : vector<1x256xf32> to vector<8x256xf32>
    %5 = arith.addf %2, %4 : vector<8x256xf32>
    %cst_5 = arith.constant 0.000000e+00 : f32
    %6 = vector.broadcast %cst_5 : f32 to vector<8x256xf32>
    %7 = arith.maximumf %5, %6 : vector<8x256xf32>
    %c0_6 = arith.constant 0 : index
    %c0_7 = arith.constant 0 : index
    %8 = vector.load %arg4[%c0_6, %c0_7] : memref<256x256xf32, #tpu.memory_space<vmem>>, vector<256x256xf32>
    %cst_8 = arith.constant dense<0.000000e+00> : vector<8x256xf32>
    %9 = tpu.matmul %7, %8, %cst_8 {dimension_numbers = #tpu.dot_dimension_numbers<[1], [0], [0], [1], [0, 0, 1, 1], [], []>} : vector<8x256xf32>, vector<256x256xf32>, vector<8x256xf32> -> vector<8x256xf32>
    %c0_9 = arith.constant 0 : index
    %c0_10 = arith.constant 0 : index
    %10 = vector.load %arg5[%c0_9, %c0_10] : memref<1x256xf32, #tpu.memory_space<vmem>>, vector<1x256xf32>
    %11 = vector.broadcast %10 : vector<1x256xf32> to vector<8x256xf32>
    %12 = arith.addf %9, %11 : vector<8x256xf32>
    %cst_11 = arith.constant 0.000000e+00 : f32
    %13 = vector.broadcast %cst_11 : f32 to vector<8x256xf32>
    %14 = arith.maximumf %12, %13 : vector<8x256xf32>
    %c0_12 = arith.constant 0 : index
    %c0_13 = arith.constant 0 : index
    %15 = vector.load %arg6[%c0_12, %c0_13] : memref<256x128xf32, #tpu.memory_space<vmem>>, vector<256x128xf32>
    %cst_14 = arith.constant dense<0.000000e+00> : vector<8x128xf32>
    %16 = tpu.matmul %14, %15, %cst_14 {dimension_numbers = #tpu.dot_dimension_numbers<[1], [0], [0], [1], [0, 0, 1, 1], [], []>} : vector<8x256xf32>, vector<256x128xf32>, vector<8x128xf32> -> vector<8x128xf32>
    %c0_15 = arith.constant 0 : index
    %c0_16 = arith.constant 0 : index
    %17 = vector.load %arg7[%c0_15, %c0_16] : memref<1x128xf32, #tpu.memory_space<vmem>>, vector<1x128xf32>
    %18 = vector.broadcast %17 : vector<1x128xf32> to vector<8x128xf32>
    %19 = arith.addf %16, %18 : vector<8x128xf32>
    %cst_17 = arith.constant 0.000000e+00 : f32
    %20 = vector.broadcast %cst_17 : f32 to vector<8x128xf32>
    %21 = arith.maximumf %19, %20 : vector<8x128xf32>
    %c0_18 = arith.constant 0 : index
    %c0_19 = arith.constant 0 : index
    %22 = vector.load %arg8[%c0_18, %c0_19] : memref<128x128xf32, #tpu.memory_space<vmem>>, vector<128x128xf32>
    %cst_20 = arith.constant dense<0.000000e+00> : vector<8x128xf32>
    %23 = tpu.matmul %21, %22, %cst_20 {dimension_numbers = #tpu.dot_dimension_numbers<[1], [0], [0], [1], [0, 0, 1, 1], [], []>} : vector<8x128xf32>, vector<128x128xf32>, vector<8x128xf32> -> vector<8x128xf32>
    %c0_21 = arith.constant 0 : index
    %c0_22 = arith.constant 0 : index
    %24 = vector.load %arg9[%c0_21, %c0_22] : memref<1x128xf32, #tpu.memory_space<vmem>>, vector<1x128xf32>
    %25 = vector.broadcast %24 : vector<1x128xf32> to vector<8x128xf32>
    %26 = arith.addf %23, %25 : vector<8x128xf32>
    %27 = math.tanh %26 : vector<8x128xf32>
    %c0_23 = arith.constant 0 : index
    %c0_24 = arith.constant 0 : index
    %28 = vector.load %arg10[%c0_23, %c0_24] : memref<8x128xf32, #tpu.memory_space<vmem>>, vector<8x128xf32>
    tpu.vector_store %arg10[%c0_23, %c0_24], %27 {strides = array<i32>} : memref<8x128xf32, #tpu.memory_space<vmem>>, vector<8x128xf32>,
    return
  }
  func.func @transform_0(%arg0: i32) -> (i32, i32) {
    %c0_i32 = arith.constant 0 : i32
    %c0_i32_0 = arith.constant 0 : i32
    return %arg0, %c0_i32 : i32, i32
  }
  func.func @transform_1(%arg0: i32) -> (i32, i32) {
    %c0_i32 = arith.constant 0 : i32
    %c0_i32_0 = arith.constant 0 : i32
    %c0_i32_1 = arith.constant 0 : i32
    return %c0_i32, %c0_i32_0 : i32, i32
  }
  func.func @transform_2(%arg0: i32) -> (i32, i32) {
    %c0_i32 = arith.constant 0 : i32
    %c0_i32_0 = arith.constant 0 : i32
    %c0_i32_1 = arith.constant 0 : i32
    return %c0_i32, %c0_i32_0 : i32, i32
  }
  func.func @transform_3(%arg0: i32) -> (i32, i32) {
    %c0_i32 = arith.constant 0 : i32
    %c0_i32_0 = arith.constant 0 : i32
    %c0_i32_1 = arith.constant 0 : i32
    return %c0_i32, %c0_i32_0 : i32, i32
  }
  func.func @transform_4(%arg0: i32) -> (i32, i32) {
    %c0_i32 = arith.constant 0 : i32
    %c0_i32_0 = arith.constant 0 : i32
    %c0_i32_1 = arith.constant 0 : i32
    return %c0_i32, %c0_i32_0 : i32, i32
  }
  func.func @transform_5(%arg0: i32) -> (i32, i32) {
    %c0_i32 = arith.constant 0 : i32
    %c0_i32_0 = arith.constant 0 : i32
    %c0_i32_1 = arith.constant 0 : i32
    return %c0_i32, %c0_i32_0 : i32, i32
  }
  func.func @transform_6(%arg0: i32) -> (i32, i32) {
    %c0_i32 = arith.constant 0 : i32
    %c0_i32_0 = arith.constant 0 : i32
    %c0_i32_1 = arith.constant 0 : i32
    return %c0_i32, %c0_i32_0 : i32, i32
  }
  func.func @transform_7(%arg0: i32) -> (i32, i32) {
    %c0_i32 = arith.constant 0 : i32
    %c0_i32_0 = arith.constant 0 : i32
    %c0_i32_1 = arith.constant 0 : i32
    return %c0_i32, %c0_i32_0 : i32, i32
  }
  func.func @transform_8(%arg0: i32) -> (i32, i32) {
    %c0_i32 = arith.constant 0 : i32
    %c0_i32_0 = arith.constant 0 : i32
    %c0_i32_1 = arith.constant 0 : i32
    return %c0_i32, %c0_i32_0 : i32, i32
  }
  func.func @transform_9(%arg0: i32) -> (i32, i32) {
    %c0_i32 = arith.constant 0 : i32
    %c0_i32_0 = arith.constant 0 : i32
    return %arg0, %c0_i32 : i32, i32
  }
}

</mosaic_0001>

<bundles_post_ra>
// kernel: _nn_forward_impl.1
= control target key start
LH: loop header
LB: loop body
LE: loop exit
PB: predicated region body
PF: predicated region fallthrough
CT: control target
= control target key end

     0   :  { %14 = vsyncpa [#allocation3], 0  ;;  %s656_s0 = inlined_call_operand.vmem [shape: f32[8,128], index: 0, kind: input, shape index: {}]   ;;  %s657_s1 = inlined_call_operand.hbm [shape: f32[128,256], index: 1, kind: input, shape index: {}]   ;;  %s658_s2 = inlined_call_operand.vmem [shape: f32[1,256], index: 2, kind: input, shape index: {}]   ;;  %s659_s3 = inlined_call_operand.hbm [shape: f32[256,256], index: 3, kind: input, shape index: {}]   ;;  %s660_s4 = inlined_call_operand.vmem [shape: f32[1,256], index: 4, kind: input, shape index: {}]   ;;  %s661_s5 = inlined_call_operand.hbm [shape: f32[256,128], index: 5, kind: input, shape index: {}]   ;;  %s662_s6 = inlined_call_operand.vmem [shape: f32[1,128], index: 6, kind: input, shape index: {}]   ;;  %s663_s7 = inlined_call_operand.hbm [shape: f32[128,128], index: 7, kind: input, shape index: {}]   ;;  %s664_s8 = inlined_call_operand.vmem [shape: f32[1,128], index: 8, kind: input, shape index: {}]   ;;  %s665_s9 = inlined_call_operand.vmem [shape: f32[8,128], index: 9, kind: output, shape index: {}]  }
   0x1   :  { %15 = vsyncpa [#allocation5], 0 }
   0x2   :  { %16 = vsyncpa [#allocation8], 0  ;;  %s38_s11 = sshll.u32 %s659_s3, 4  ;;  %s568_s12 = smov [#allocation4]   ;;  %s39_s11 = int_to_ptr.hbm [resolvable:$true] %s38_s11 }
   0x3   :  { %s40_s13 = sshll.u32 %s568_s12, 4  ;;  %s23_s16 = sshll.u32 %s657_s1, 4  ;;  %s41_s13 = int_to_ptr.vmem [resolvable:$true] %s40_s13  ;;  %s24_s16 = int_to_ptr.hbm [resolvable:$true] %s23_s16 }
   0x4   :  { %s569_s17 = smov 256   ;;  %s570_s18 = smov 16  }
   0x5   :  { %46 = dma.hbm_to_vmem [thread:$0]  %s39_s11, 8192, %s41_s13, [#allocation5], %s569_s17, %s569_s17, %s570_s18  }
   0x6   :  { %s571_s19 = smov [#allocation2]   ;;  %s53_s23 = sshll.u32 %s661_s5, 4  ;;  %s54_s23 = int_to_ptr.hbm [resolvable:$true] %s53_s23 }
   0x7   :  { %s25_s20 = sshll.u32 %s571_s19, 4  ;;  %s572_s3 = smov [#allocation6]   ;;  %s26_s20 = int_to_ptr.vmem [resolvable:$true] %s25_s20 }
   0x8   :  { %31 = dma.hbm_to_vmem [thread:$0]  %s24_s16, 4096, %s26_s20, [#allocation3], %s569_s17, %s569_s17, %s570_s18  }
   0x9   :  { %s55_s24 = sshll.u32 %s572_s3, 4  ;;  %s68_s1 = sshll.u32 %s663_s7, 4  ;;  %s56_s24 = int_to_ptr.vmem [resolvable:$true] %s55_s24  ;;  %s69_s1 = int_to_ptr.hbm [resolvable:$true] %s68_s1 }
   0xa   :  { %s573_s27 = smov 128   ;;  %s574_s28 = smov 8  }
   0xb   :  { %61 = dma.hbm_to_vmem [thread:$0]  %s54_s23, 4096, %s56_s24, [#allocation5], %s573_s27, %s573_s27, %s574_s28  }
   0xc   :  { %s575_s29 = smov [#allocation7]  }
   0xd   :  { %s70_s30 = sshll.u32 %s575_s29, 4  ;;  %s71_s30 = int_to_ptr.vmem [resolvable:$true] %s70_s30 }
   0xe   :  { %76 = dma.hbm_to_vmem [thread:$0]  %s69_s1, 2048, %s71_s30, [#allocation8], %s573_s27, %s573_s27, %s574_s28  }
   0xf   :  { %562 = dma.done.wait [#allocation3], 4096  }
  0x10   :  { %563 = vsyncadd [#allocation3], 4294963200 }
  0x11   :  { %564 = dma.done.wait [#allocation5], 12288  }
  0x12   :  { %565 = vsyncadd [#allocation5], 4294955008 }
  0x13   :  { %566 = dma.done.wait [#allocation8], 2048  }
  0x14   :  { %567 = vsyncadd [#allocation8], 4294965248  ;;  %v126_v0 = vld [vmem:[#allocation2 + $0xf0] sm:$0xff]  ;;  %v124_v1 = vld [vmem:[#allocation2 + $0xe0] sm:$0xff] }
  0x15   :  { %v127_v2 = vld [vmem:[#allocation2 + $0xf8] sm:$0xff]  ;;  %134 = vmatpush.msra.mxu0 %v126_v0  ;;  %v125_v3 = vld [vmem:[#allocation2 + $0xe8] sm:$0xff]  ;;  %v122_v4 = vld [vmem:[#allocation2 + $0xd0] sm:$0xff] }
  0x16   :  { %154 = vmatpush.msra.mxu1 %v127_v2  ;;  %v123_v5 = vld [vmem:[#allocation2 + $0xd8] sm:$0xff]  ;;  %v120_v6 = vld [vmem:[#allocation2 + $0xc0] sm:$0xff]  ;;  %v121_v7 = vld [vmem:[#allocation2 + $0xc8] sm:$0xff] }
  0x17   :  { %135 = vmatpush.msra.mxu0 %v124_v1  ;;  %v118_v8 = vld [vmem:[#allocation2 + $0xb0] sm:$0xff]  ;;  %v119_v9 = vld [vmem:[#allocation2 + $0xb8] sm:$0xff]  ;;  %v116_v10 = vld [vmem:[#allocation2 + $0xa0] sm:$0xff] }
  0x18   :  { %155 = vmatpush.msra.mxu1 %v125_v3  ;;  %v117_v11 = vld [vmem:[#allocation2 + $0xa8] sm:$0xff]  ;;  %v114_v12 = vld [vmem:[#allocation2 + $0x90] sm:$0xff]  ;;  %v115_v13 = vld [vmem:[#allocation2 + $0x98] sm:$0xff] }
  0x19   :  { %136 = vmatpush.msra.mxu0 %v122_v4  ;;  %v206_v14 = vld [vmem:[#allocation4 + $0xf0] sm:$0xff]  ;;  %v204_v15 = vld [vmem:[#allocation4 + $0xe0] sm:$0xff]  ;;  %v113_v17 = vld [vmem:[#allocation2 + $0x88] sm:$0xff] }
  0x1a   :  { %156 = vmatpush.msra.mxu1 %v123_v5  ;;  %v112_v16 = vld [vmem:[#allocation2 + $0x80] sm:$0xff]  ;;  %246 = vmatpush.msra.mxu2 %v206_v14  ;;  %v238_v18 = vld [vmem:[#allocation4 + $0x1f0] sm:$0xff]  ;;  %v111_v22 = vld [vmem:[#allocation2 + $0x78] sm:$0xff] }
  0x1b   :  { %137 = vmatpush.msra.mxu0 %v120_v6  ;;  %v202_v19 = vld [vmem:[#allocation4 + $0xd0] sm:$0xff]  ;;  %v236_v20 = vld [vmem:[#allocation4 + $0x1e0] sm:$0xff]  ;;  %266 = vmatpush.msra.mxu3 %v238_v18  ;;  %v109_v26 = vld [vmem:[#allocation2 + $0x68] sm:$0xff] }
  0x1c   :  { %157 = vmatpush.msra.mxu1 %v121_v7  ;;  %v110_v21 = vld [vmem:[#allocation2 + $0x70] sm:$0xff]  ;;  %247 = vmatpush.msra.mxu2 %v204_v15  ;;  %v200_v23 = vld [vmem:[#allocation4 + $0xc0] sm:$0xff]  ;;  %v107_v30 = vld [vmem:[#allocation2 + $0x58] sm:$0xff] }
  0x1d   :  { %138 = vmatpush.msra.mxu0 %v118_v8  ;;  %v234_v24 = vld [vmem:[#allocation4 + $0x1d0] sm:$0xff]  ;;  %v108_v25 = vld [vmem:[#allocation2 + $0x60] sm:$0xff]  ;;  %267 = vmatpush.msra.mxu3 %v236_v20  ;;  %v105_v34 = vld [vmem:[#allocation2 + $0x48] sm:$0xff] }
  0x1e   :  { %158 = vmatpush.msra.mxu1 %v119_v9  ;;  %248 = vmatpush.msra.mxu2 %v202_v19  ;;  %v198_v27 = vld [vmem:[#allocation4 + $0xb0] sm:$0xff]  ;;  %v232_v28 = vld [vmem:[#allocation4 + $0x1c0] sm:$0xff]  ;;  %v103_v38 = vld [vmem:[#allocation2 + $0x38] sm:$0xff] }
  0x1f   :  { %139 = vmatpush.msra.mxu0 %v116_v10  ;;  %v106_v29 = vld [vmem:[#allocation2 + $0x50] sm:$0xff]  ;;  %268 = vmatpush.msra.mxu3 %v234_v24  ;;  %v196_v31 = vld [vmem:[#allocation4 + $0xa0] sm:$0xff]  ;;  %v101_v42 = vld [vmem:[#allocation2 + $0x28] sm:$0xff] }
  0x20   :  { %159 = vmatpush.msra.mxu1 %v117_v11  ;;  %249 = vmatpush.msra.mxu2 %v200_v23  ;;  %v230_v32 = vld [vmem:[#allocation4 + $0x1b0] sm:$0xff]  ;;  %v104_v33 = vld [vmem:[#allocation2 + $0x40] sm:$0xff]  ;;  %v99_v46 = vld [vmem:[#allocation2 + $0x18] sm:$0xff] }
  0x21   :  { %140 = vmatpush.msra.mxu0 %v114_v12  ;;  %269 = vmatpush.msra.mxu3 %v232_v28  ;;  %v194_v35 = vld [vmem:[#allocation4 + $0x90] sm:$0xff]  ;;  %v228_v36 = vld [vmem:[#allocation4 + $0x1a0] sm:$0xff]  ;;  %v97_v50 = vld [vmem:[#allocation2 + $0x8] sm:$0xff] }
  0x22   :  { %160 = vmatpush.msra.mxu1 %v115_v13  ;;  %250 = vmatpush.msra.mxu2 %v198_v27  ;;  %v102_v37 = vld [vmem:[#allocation2 + $0x30] sm:$0xff]  ;;  %v192_v39 = vld [vmem:[#allocation4 + $0x80] sm:$0xff]  ;;  %v207_v52 = vld [vmem:[#allocation4 + $0xf8] sm:$0xff] }
  0x23   :  { %141 = vmatpush.msra.mxu0 %v112_v16  ;;  %270 = vmatpush.msra.mxu3 %v230_v32  ;;  %v226_v40 = vld [vmem:[#allocation4 + $0x190] sm:$0xff]  ;;  %v100_v41 = vld [vmem:[#allocation2 + $0x20] sm:$0xff]  ;;  %v239_v53 = vld [vmem:[#allocation4 + $0x1f8] sm:$0xff] }
  0x24   :  { %161 = vmatpush.msra.mxu1 %v113_v17  ;;  %251 = vmatpush.msra.mxu2 %v196_v31  ;;  %v190_v43 = vld [vmem:[#allocation4 + $0x70] sm:$0xff]  ;;  %v224_v44 = vld [vmem:[#allocation4 + $0x180] sm:$0xff]  ;;  %v205_v56 = vld [vmem:[#allocation4 + $0xe8] sm:$0xff] }
  0x25   :  { %142 = vmatpush.msra.mxu0 %v110_v21  ;;  %271 = vmatpush.msra.mxu3 %v228_v36  ;;  %v98_v45 = vld [vmem:[#allocation2 + $0x10] sm:$0xff]  ;;  %v96_v47 = vld [vmem:[#allocation2] sm:$0xff]  ;;  %v237_v57 = vld [vmem:[#allocation4 + $0x1e8] sm:$0xff] }
  0x26   :  { %162 = vmatpush.msra.mxu1 %v111_v22  ;;  %252 = vmatpush.msra.mxu2 %v194_v35  ;;  %v188_v48 = vld [vmem:[#allocation4 + $0x60] sm:$0xff]  ;;  %v222_v49 = vld [vmem:[#allocation4 + $0x170] sm:$0xff]  ;;  %v203_v60 = vld [vmem:[#allocation4 + $0xd8] sm:$0xff] }
  0x27   :  { %143 = vmatpush.msra.mxu0 %v108_v25  ;;  %272 = vmatpush.msra.mxu3 %v226_v40  ;;  %v95_v51 = vld [vmem:[%s656_s0] sm:$0xff]  ;;  %v186_v54 = vld [vmem:[#allocation4 + $0x50] sm:$0xff]  ;;  %v235_v61 = vld [vmem:[#allocation4 + $0x1d8] sm:$0xff] }
  0x28   :  { %163 = vmatpush.msra.mxu1 %v109_v26  ;;  %253 = vmatpush.msra.mxu2 %v192_v39  ;;  %v220_v55 = vld [vmem:[#allocation4 + $0x160] sm:$0xff]  ;;  %v218_v59 = vld [vmem:[#allocation4 + $0x150] sm:$0xff]  ;;  %v201_v0 = vld [vmem:[#allocation4 + $0xc8] sm:$0xff] }
  0x29   :  { %144 = vmatpush.msra.mxu0 %v106_v29  ;;  %273 = vmatpush.msra.mxu3 %v224_v44  ;;  %v184_v58 = vld [vmem:[#allocation4 + $0x40] sm:$0xff]  ;;  %v182_v62 = vld [vmem:[#allocation4 + $0x30] sm:$0xff]  ;;  %v233_v1 = vld [vmem:[#allocation4 + $0x1c8] sm:$0xff] }
  0x2a   :  { %164 = vmatpush.msra.mxu1 %v107_v30  ;;  %254 = vmatpush.msra.mxu2 %v190_v43  ;;  %v216_v63 = vld [vmem:[#allocation4 + $0x140] sm:$0xff]  ;;  %v199_v2 = vld [vmem:[#allocation4 + $0xb8] sm:$0xff]  ;;  %v197_v4 = vld [vmem:[#allocation4 + $0xa8] sm:$0xff] }
  0x2b   :  { %145 = vmatpush.msra.mxu0 %v104_v33  ;;  %274 = vmatpush.msra.mxu3 %v222_v49  ;;  %v231_v3 = vld [vmem:[#allocation4 + $0x1b8] sm:$0xff]  ;;  %v229_v5 = vld [vmem:[#allocation4 + $0x1a8] sm:$0xff]  ;;  %v180_v19 = vld [vmem:[#allocation4 + $0x20] sm:$0xff] }
  0x2c   :  { %165 = vmatpush.msra.mxu1 %v105_v34  ;;  %255 = vmatpush.msra.mxu2 %v188_v48  ;;  %v195_v6 = vld [vmem:[#allocation4 + $0x98] sm:$0xff]  ;;  %v193_v8 = vld [vmem:[#allocation4 + $0x88] sm:$0xff]  ;;  %v214_v20 = vld [vmem:[#allocation4 + $0x130] sm:$0xff] }
  0x2d   :  { %146 = vmatpush.msra.mxu0 %v102_v37  ;;  %275 = vmatpush.msra.mxu3 %v220_v55  ;;  %v227_v7 = vld [vmem:[#allocation4 + $0x198] sm:$0xff]  ;;  %v225_v9 = vld [vmem:[#allocation4 + $0x188] sm:$0xff]  ;;  %v178_v23 = vld [vmem:[#allocation4 + $0x10] sm:$0xff] }
  0x2e   :  { %166 = vmatpush.msra.mxu1 %v103_v38  ;;  %256 = vmatpush.msra.mxu2 %v186_v54  ;;  %v191_v10 = vld [vmem:[#allocation4 + $0x78] sm:$0xff]  ;;  %v189_v12 = vld [vmem:[#allocation4 + $0x68] sm:$0xff]  ;;  %v212_v24 = vld [vmem:[#allocation4 + $0x120] sm:$0xff] }
  0x2f   :  { %147 = vmatpush.msra.mxu0 %v100_v41  ;;  %276 = vmatpush.msra.mxu3 %v218_v59  ;;  %v223_v11 = vld [vmem:[#allocation4 + $0x178] sm:$0xff]  ;;  %v221_v13 = vld [vmem:[#allocation4 + $0x168] sm:$0xff]  ;;  %v176_v27 = vld [vmem:[#allocation4] sm:$0xff] }
  0x30   :  { %167 = vmatpush.msra.mxu1 %v101_v42  ;;  %257 = vmatpush.msra.mxu2 %v184_v58  ;;  %v187_v14 = vld [vmem:[#allocation4 + $0x58] sm:$0xff]  ;;  %v185_v16 = vld [vmem:[#allocation4 + $0x48] sm:$0xff]  ;;  %v210_v28 = vld [vmem:[#allocation4 + $0x110] sm:$0xff] }
  0x31   :  { %148 = vmatpush.msra.mxu0 %v98_v45  ;;  %277 = vmatpush.msra.mxu3 %v216_v63  ;;  %v219_v15 = vld [vmem:[#allocation4 + $0x158] sm:$0xff]  ;;  %v217_v17 = vld [vmem:[#allocation4 + $0x148] sm:$0xff]  ;;  %v208_v31 = vld [vmem:[#allocation4 + $0x100] sm:$0xff] }
  0x32   :  { %168 = vmatpush.msra.mxu1 %v99_v46  ;;  %258 = vmatpush.msra.mxu2 %v182_v62  ;;  %v183_v18 = vld [vmem:[#allocation4 + $0x38] sm:$0xff]  ;;  %v181_v21 = vld [vmem:[#allocation4 + $0x28] sm:$0xff]  ;;  %v358_v34 = vld [vmem:[#allocation6 + $0xf0] sm:$0xff] }
  0x33   :  { %149 = vmatpush.msra.mxu0 %v96_v47  ;;  %278 = vmatpush.msra.mxu3 %v214_v20  ;;  %v215_v22 = vld [vmem:[#allocation4 + $0x138] sm:$0xff]  ;;  %v213_v26 = vld [vmem:[#allocation4 + $0x128] sm:$0xff]  ;;  %v342_v36 = vld [vmem:[#allocation6 + $0x70] sm:$0xff] }
  0x34   :  { %169 = vmatpush.msra.mxu1 %v97_v50  ;;  %150 = vmatmul.f32.vlgmr.msra.gmra.mxu0 %v95_v51  ;;  %v179_v25 = vld [vmem:[#allocation4 + $0x18] sm:$0xff]  ;;  %v177_v29 = vld [vmem:[#allocation4 + $0x8] sm:$0xff]  ;;  %v356_v39 = vld [vmem:[#allocation6 + $0xe0] sm:$0xff] }
  0x35   :  { %170 = vmatmul.f32.vlgmr.msra.gmra.mxu1 %v95_v51  ;;  %286 = vmatpush.msrb.mxu0 %v207_v52  ;;  %v211_v30 = vld [vmem:[#allocation4 + $0x118] sm:$0xff]  ;;  %v209_v32 = vld [vmem:[#allocation4 + $0x108] sm:$0xff]  ;;  %v340_v40 = vld [vmem:[#allocation6 + $0x60] sm:$0xff] }
  0x36   :  { %306 = vmatpush.msrb.mxu1 %v239_v53  ;;  %259 = vmatpush.msra.mxu2 %v180_v19  ;;  %v359_v33 = vld [vmem:[#allocation6 + $0xf8] sm:$0xff]  ;;  %v357_v37 = vld [vmem:[#allocation6 + $0xe8] sm:$0xff]  ;;  %v354_v43 = vld [vmem:[#allocation6 + $0xd0] sm:$0xff] }
  0x37   :  { %287 = vmatpush.msrb.mxu0 %v205_v56  ;;  %279 = vmatpush.msra.mxu3 %v212_v24  ;;  %v343_v35 = vld [vmem:[#allocation6 + $0x78] sm:$0xff]  ;;  %v341_v38 = vld [vmem:[#allocation6 + $0x68] sm:$0xff]  ;;  %v338_v44 = vld [vmem:[#allocation6 + $0x50] sm:$0xff] }
  0x38   :  { %307 = vmatpush.msrb.mxu1 %v237_v57  ;;  %260 = vmatpush.msra.mxu2 %v178_v23  ;;  %v355_v41 = vld [vmem:[#allocation6 + $0xd8] sm:$0xff]  ;;  %v353_v45 = vld [vmem:[#allocation6 + $0xc8] sm:$0xff]  ;;  %v352_v47 = vld [vmem:[#allocation6 + $0xc0] sm:$0xff] }
  0x39   :  { %288 = vmatpush.msrb.mxu0 %v203_v60  ;;  %280 = vmatpush.msra.mxu3 %v210_v28  ;;  %v339_v42 = vld [vmem:[#allocation6 + $0x58] sm:$0xff]  ;;  %v337_v46 = vld [vmem:[#allocation6 + $0x48] sm:$0xff]  ;;  %v336_v48 = vld [vmem:[#allocation6 + $0x40] sm:$0xff] }
  0x3a   :  { %308 = vmatpush.msrb.mxu1 %v235_v61  ;;  %261 = vmatpush.msra.mxu2 %v176_v27  ;;  %v351_v49 = vld [vmem:[#allocation6 + $0xb8] sm:$0xff]  ;;  %v350_v51 = vld [vmem:[#allocation6 + $0xb0] sm:$0xff]  ;;  %v349_v52 = vld [vmem:[#allocation6 + $0xa8] sm:$0xff] }
  0x3b   :  { %289 = vmatpush.msrb.mxu0 %v201_v0  ;;  %281 = vmatpush.msra.mxu3 %v208_v31  ;;  %v335_v50 = vld [vmem:[#allocation6 + $0x38] sm:$0xff]  ;;  %v128_v53 = vld [vmem:[%s658_s2] sm:$0x3]  ;;  %v334_v63 = vld [vmem:[#allocation6 + $0x30] sm:$0xff] }
  0x3c   :  { %309 = vmatpush.msrb.mxu1 %v233_v1  ;;  %364 = vmatpush.msrb.mxu2 %v343_v35  ;;  %v348_v54 = vld [vmem:[#allocation6 + $0xa0] sm:$0xff]  ;;  %v130_v55 = vperm.slane %v128_v53, 0  ;;  %v131_v56 = vperm.slane %v128_v53, 1  ;;  %v347_v0 = vld [vmem:[#allocation6 + $0x98] sm:$0xff]  ;;  %v333_v1 = vld [vmem:[#allocation6 + $0x28] sm:$0xff] }
  0x3d   :  { %290 = vmatpush.msrb.mxu0 %v199_v2  ;;  %384 = vmatpush.msrb.mxu3 %v359_v33  ;;  %v346_v2 = vld [vmem:[#allocation6 + $0x90] sm:$0xff]  ;;  %v412_v19 = vld [vmem:[#allocation7 + $0x38] sm:$0xff]  ;;  %v410_v33 = vld [vmem:[#allocation7 + $0x28] sm:$0xff] }
  0x3e   :  { %310 = vmatpush.msrb.mxu1 %v231_v3  ;;  %365 = vmatpush.msrb.mxu2 %v342_v36  ;;  %v332_v3 = vld [vmem:[#allocation6 + $0x20] sm:$0xff]  ;;  %v408_v35 = vld [vmem:[#allocation7 + $0x18] sm:$0xff]  ;;  %v407_v36 = vld [vmem:[#allocation7 + $0x10] sm:$0xff] }
  0x3f   :  { %291 = vmatpush.msrb.mxu0 %v197_v4  ;;  %385 = vmatpush.msrb.mxu3 %v358_v34  ;;  %v345_v4 = vld [vmem:[#allocation6 + $0x88] sm:$0xff]  ;;  %v409_v34 = vld [vmem:[#allocation7 + $0x20] sm:$0xff] }
  0x40   :  { %311 = vmatpush.msrb.mxu1 %v229_v5  ;;  %366 = vmatpush.msrb.mxu2 %v341_v38  ;;  %v331_v5 = vld [vmem:[#allocation6 + $0x18] sm:$0xff]  ;;  %v405_v38 = vld [vmem:[#allocation7] sm:$0xff] }
  0x41   :  { %292 = vmatpush.msrb.mxu0 %v195_v6  ;;  %386 = vmatpush.msrb.mxu3 %v357_v37  ;;  %v344_v6 = vld [vmem:[#allocation6 + $0x80] sm:$0xff]  ;;  %v406_v37 = vld [vmem:[#allocation7 + $0x8] sm:$0xff] }
  0x42   :  { %312 = vmatpush.msrb.mxu1 %v227_v7  ;;  %367 = vmatpush.msrb.mxu2 %v340_v40  ;;  %v330_v7 = vld [vmem:[#allocation6 + $0x10] sm:$0xff] }
  0x43   :  { %293 = vmatpush.msrb.mxu0 %v193_v8  ;;  %387 = vmatpush.msrb.mxu3 %v356_v39  ;;  %v329_v8 = vld [vmem:[#allocation6 + $0x8] sm:$0xff]  ;;  %v462_v39 = vld [vmem:[%s662_s6] ss:$0 sm:$0xff] }
  0x44   :  { %313 = vmatpush.msrb.mxu1 %v225_v9  ;;  %368 = vmatpush.msrb.mxu2 %v339_v42  ;;  %v328_v9 = vld [vmem:[#allocation6] sm:$0xff] }
  0x45   :  { %294 = vmatpush.msrb.mxu0 %v191_v10  ;;  %388 = vmatpush.msrb.mxu3 %v355_v41  ;;  %v420_v10 = vld [vmem:[#allocation7 + $0x78] sm:$0xff] }
  0x46   :  { %314 = vmatpush.msrb.mxu1 %v223_v11  ;;  %369 = vmatpush.msrb.mxu2 %v338_v44  ;;  %v419_v11 = vld [vmem:[#allocation7 + $0x70] sm:$0xff] }
  0x47   :  { %295 = vmatpush.msrb.mxu0 %v189_v12  ;;  %389 = vmatpush.msrb.mxu3 %v354_v43  ;;  %v418_v12 = vld [vmem:[#allocation7 + $0x68] sm:$0xff] }
  0x48   :  { %315 = vmatpush.msrb.mxu1 %v221_v13  ;;  %370 = vmatpush.msrb.mxu2 %v337_v46  ;;  %v417_v13 = vld [vmem:[#allocation7 + $0x60] sm:$0xff] }
  0x49   :  { %296 = vmatpush.msrb.mxu0 %v187_v14  ;;  %390 = vmatpush.msrb.mxu3 %v353_v45  ;;  %v416_v14 = vld [vmem:[#allocation7 + $0x58] sm:$0xff]  ;;  %v463_v45 = vld [vmem:[%s664_s8] ss:$0 sm:$0xff] }
  0x4a   :  { %316 = vmatpush.msrb.mxu1 %v219_v15  ;;  %371 = vmatpush.msrb.mxu2 %v336_v48  ;;  %v415_v15 = vld [vmem:[#allocation7 + $0x50] sm:$0xff] }
  0x4b   :  { %297 = vmatpush.msrb.mxu0 %v185_v16  ;;  %391 = vmatpush.msrb.mxu3 %v352_v47  ;;  %v414_v16 = vld [vmem:[#allocation7 + $0x48] sm:$0xff] }
  0x4c   :  { %317 = vmatpush.msrb.mxu1 %v217_v17  ;;  %372 = vmatpush.msrb.mxu2 %v335_v50  ;;  %v413_v17 = vld [vmem:[#allocation7 + $0x40] sm:$0xff] }
  0x4d   :  { %298 = vmatpush.msrb.mxu0 %v183_v18  ;;  %392 = vmatpush.msrb.mxu3 %v351_v49  ;;  %v240_v18 = vld [vmem:[%s660_s4] sm:$0x3] }
  0x4e   :  { %318 = vmatpush.msrb.mxu1 %v215_v22  ;;  %373 = vmatpush.msrb.mxu2 %v334_v63  ;;  %v243_v20 = vperm.slane %v240_v18, 1 }
  0x4f   :  { %299 = vmatpush.msrb.mxu0 %v181_v21  ;;  %393 = vmatpush.msrb.mxu3 %v350_v51 }
  0x50   :  { %319 = vmatpush.msrb.mxu1 %v213_v26  ;;  %374 = vmatpush.msrb.mxu2 %v333_v1 }
  0x51   :  { %300 = vmatpush.msrb.mxu0 %v179_v25  ;;  %394 = vmatpush.msrb.mxu3 %v349_v52  ;;  %v242_v25 = vperm.slane %v240_v18, 0 }
  0x52   :  { %320 = vmatpush.msrb.mxu1 %v211_v30  ;;  %375 = vmatpush.msrb.mxu2 %v332_v3 }
  0x53   :  { %301 = vmatpush.msrb.mxu0 %v177_v29  ;;  %395 = vmatpush.msrb.mxu3 %v348_v54 }
  0x54   :  { %321 = vmatpush.msrb.mxu1 %v209_v32  ;;  %376 = vmatpush.msrb.mxu2 %v331_v5  ;;  %v411_v32 = vld [vmem:[#allocation7 + $0x30] sm:$0xff] }
  0x55   :  { %396 = vmatpush.msrb.mxu3 %v347_v0  ;;  %425 = vmatpush.msra.mxu0 %v420_v10 }
  0x56   :  { %377 = vmatpush.msrb.mxu2 %v330_v7 }
  0x57   :  { %397 = vmatpush.msrb.mxu3 %v346_v2  ;;  %426 = vmatpush.msra.mxu0 %v419_v11 }
  0x58   :  { %378 = vmatpush.msrb.mxu2 %v329_v8 }
  0x59   :  { %398 = vmatpush.msrb.mxu3 %v345_v4  ;;  %427 = vmatpush.msra.mxu0 %v418_v12 }
  0x5a   :  { %379 = vmatpush.msrb.mxu2 %v328_v9 }
  0x5b   :  { %399 = vmatpush.msrb.mxu3 %v344_v6  ;;  %428 = vmatpush.msra.mxu0 %v417_v13 }
  0x5d   :  { %429 = vmatpush.msra.mxu0 %v416_v14 }
  0x5f   :  { %430 = vmatpush.msra.mxu0 %v415_v15 }
  0x61   :  { %431 = vmatpush.msra.mxu0 %v414_v16 }
  0x63   :  { %432 = vmatpush.msra.mxu0 %v413_v17 }
  0x65   :  { %433 = vmatpush.msra.mxu0 %v412_v19 }
  0x67   :  { %434 = vmatpush.msra.mxu0 %v411_v32 }
  0x69   :  { %435 = vmatpush.msra.mxu0 %v410_v33 }
  0x6b   :  { %436 = vmatpush.msra.mxu0 %v409_v34 }
  0x6d   :  { %437 = vmatpush.msra.mxu0 %v408_v35 }
  0x6f   :  { %438 = vmatpush.msra.mxu0 %v407_v36 }
  0x71   :  { %439 = vmatpush.msra.mxu0 %v406_v37 }
  0x73   :  { %440 = vmatpush.msra.mxu0 %v405_v38 }
  0xb1   :  { %v151_v57 = vpop.f32.mrf.mxu0 }
  0xb2   :  { %v171_v58 = vpop.f32.mrf.mxu1  ;;  %v152_v59 = vadd.f32 %v151_v57, %v130_v55 }
  0xb3   :  { %v172_v60 = vadd.f32 %v171_v58, %v131_v56 }
  0xb4   :  { %v174_v61 = vmax.f32 %v152_v59, 0.0 }
  0xb5   :  { %v175_v62 = vmax.f32 %v172_v60, 0.0 }
  0xb6   :  { %262 = vmatmul.f32.vlgmr.msra.gmra.mxu2 %v174_v61  ;;  %302 = vmatmul.f32.vlgmr.msrb.gmra.mxu0 %v174_v61 }
  0xb7   :  { %282 = vmatmul.f32.vlgmr.msra.gmra.mxu3 %v175_v62  ;;  %322 = vmatmul.f32.vlgmr.msrb.gmra.mxu1 %v175_v62 }
 0x133   :  { %v303_v21 = vpop.f32.mrf.mxu0 }
 0x134   :  { %v304_v22 = vadd.f32 %v303_v21, %v243_v20  ;;  %v323_v23 = vpop.f32.mrf.mxu1 }
 0x136   :  { %v324_v24 = vadd.f32 %v323_v23, %v304_v22 }
 0x138   :  { %v327_v26 = vmax.f32 %v324_v24, 0.0 }
 0x139   :  { %v263_v27 = vpop.f32.mrf.mxu2 }
 0x13a   :  { %v264_v28 = vadd.f32 %v263_v27, %v242_v25  ;;  %400 = vmatmul.f32.vlgmr.msrb.gmra.mxu3 %v327_v26  ;;  %v283_v29 = vpop.f32.mrf.mxu3 }
 0x13c   :  { %v284_v30 = vadd.f32 %v283_v29, %v264_v28 }
 0x13e   :  { %v326_v31 = vmax.f32 %v284_v30, 0.0 }
 0x140   :  { %380 = vmatmul.f32.vlgmr.msrb.gmra.mxu2 %v326_v31 }
 0x1bd   :  { %v401_v42 = vpop.f32.mrf.mxu3 }
 0x1c3   :  { %v381_v40 = vpop.f32.mrf.mxu2 }
 0x1c4   :  { %v382_v41 = vadd.f32 %v462_v39, %v381_v40 }
 0x1c6   :  { %v402_v43 = vadd.f32 %v401_v42, %v382_v41 }
 0x1c8   :  { %v404_v44 = vmax.f32 %v402_v43, 0.0 }
 0x1ca   :  { %441 = vmatmul.f32.vlgmr.msra.gmra.mxu0 %v404_v44 }
 0x247   :  { %v442_v46 = vpop.f32.mrf.mxu0 }
 0x248   :  { %v443_v47 = vadd.f32 %v463_v45, %v442_v46 }
 0x24a   :  { %464 = vtanh.f32 %v443_v47 }
 0x250   :  { %v465_v48 = vpop.eup %464 }
 0x251   :  { %446 = vst [vmem:[%s665_s9] sm:$0xff] %v465_v48 }
 0x252   :  { %451 = vsyncpa [#allocation3], 1 }
 0x253   :  { %452 = vsyncpa [#allocation5], 1 }
 0x254   :  { %453 = vsyncpa [#allocation8], 1 }

</bundles_post_ra>
